<compile_context>
chip_gen: v5e
topology: v5e:2x2
jax: 0.10.0
libtpu: 0.0.40
codegen_flags: <defaults>
</compile_context>

<pallas_src>
import functools

import jax
import jax.numpy as jnp
from jax.experimental import pallas as pl
from jax.experimental.pallas import tpu as pltpu

LANE = 128


def _round_up(x, m):
    return ((x + m - 1) // m) * m


def _pick_tiles(n):
    """(tm rows, tk reduction) — biggest streaming tiles that make sense."""
    if n >= 2048:
        return 512, 1024
    if n >= 512:
        return 256, 512
    return 128, 128


# ---------------------------------------------------------------------------
# Kernel 1: feature transform  XW = X @ W   (row-tiled, bf16 in / bf16 out)
# ---------------------------------------------------------------------------
def _feat_xform_kernel(x_ref, w_ref, o_ref):
    o_ref[...] = jnp.dot(
        x_ref[...], w_ref[...], preferred_element_type=jnp.float32
    ).astype(o_ref.dtype)


def feat_xform(x_bf16, w_bf16, tm):
    n_rows, f_in = x_bf16.shape
    f_out = w_bf16.shape[1]
    return pl.pallas_call(
        _feat_xform_kernel,
        out_shape=jax.ShapeDtypeStruct((n_rows, f_out), jnp.bfloat16),
        grid=(n_rows // tm,),
        in_specs=[
            pl.BlockSpec((tm, f_in), lambda i: (i, 0)),
            pl.BlockSpec((f_in, f_out), lambda i: (0, 0)),
        ],
        out_specs=pl.BlockSpec((tm, f_out), lambda i: (i, 0)),
        compiler_params=pltpu.CompilerParams(
            dimension_semantics=("parallel",)),
    )(x_bf16, w_bf16)


# ---------------------------------------------------------------------------
# Kernel 2: aggregation  out = relu(Aq @ XW + b)   (Aq is int8, scale already
# folded into XW), grid = (row tiles [parallel], reduction tiles [arbitrary]).
# ---------------------------------------------------------------------------
def _aggregate_kernel(a_ref, xw_ref, b_ref, o_ref, acc_ref):
    k = pl.program_id(1)

    @pl.when(k == 0)
    def _():
        acc_ref[...] = jnp.zeros_like(acc_ref)

    # int8 tile -> bf16 for the MXU (exact for |q| <= 127); upcast rides in
    # otherwise-idle VALU slots since this kernel is DMA-bound on A.
    a_bf16 = a_ref[...].astype(jnp.float32).astype(jnp.bfloat16)
    acc_ref[...] += jnp.dot(
        a_bf16, xw_ref[...], preferred_element_type=jnp.float32)

    @pl.when(k == pl.num_programs(1) - 1)
    def _():
        o_ref[...] = jnp.maximum(acc_ref[...] + b_ref[...], 0.0).astype(o_ref.dtype)


def aggregate_relu(a_q, xw_bf16, b_row, out_dtype, tm, tk):
    rows_pad, red_pad = a_q.shape
    f = xw_bf16.shape[1]
    return pl.pallas_call(
        _aggregate_kernel,
        out_shape=jax.ShapeDtypeStruct((rows_pad, f), out_dtype),
        grid=(rows_pad // tm, red_pad // tk),
        in_specs=[
            pl.BlockSpec((tm, tk), lambda i, k: (i, k)),
            pl.BlockSpec((tk, f), lambda i, k: (k, 0)),
            pl.BlockSpec((1, f), lambda i, k: (0, 0)),
        ],
        out_specs=pl.BlockSpec((tm, f), lambda i, k: (i, 0)),
        scratch_shapes=[pltpu.VMEM((tm, f), jnp.float32)],
        compiler_params=pltpu.CompilerParams(
            dimension_semantics=("parallel", "arbitrary")),
    )(a_q, xw_bf16, b_row)


# ---------------------------------------------------------------------------
# One-time per-graph prep (OUTSIDE the jitted forward): symmetric int8
# quantization of A_hat + independent row / reduction padding.
# ---------------------------------------------------------------------------
def prepare_adjacency(a_hat, tm, tk):
    n = a_hat.shape[0]
    rows_pad = _round_up(n, tm)
    red_pad = _round_up(n, tk)
    # Symmetric (zero-point-free) quant: padded zeros stay exactly zero.
    scale = jnp.maximum(jnp.max(jnp.abs(a_hat)), 1e-12) / 127.0
    a_q = jnp.clip(jnp.round(a_hat / scale), 0, 127).astype(jnp.int8)
    a_q = jnp.pad(a_q, ((0, rows_pad - n), (0, red_pad - n)))
    return a_q, scale.astype(jnp.float32)


# ---------------------------------------------------------------------------
# Two-layer GCN forward: relu(conv2(g, relu(conv1(g, x))))
# ---------------------------------------------------------------------------
@functools.partial(jax.jit, static_argnames=("tm", "tk"))
def two_layer_gcn(a_q, a_scale, x, w1, b1, w2, b2, *, tm, tk):
    n = x.shape[0]
    rows_pad, red_pad = a_q.shape
    f_in, f_hid = w1.shape
    f_out = w2.shape[1]

    f_in_p = _round_up(f_in, LANE)
    f_hid_p = _round_up(f_hid, LANE)
    f_out_p = _round_up(f_out, LANE)
    feat_tm = min(512, tk)  # divides red_pad (red_pad is a multiple of tk)

    # Fold the int8 dequant scale into the (tiny) weights:
    #   scale * (Aq @ (X @ W)) == Aq @ (X @ (scale * W))
    x16 = jnp.pad(x.astype(jnp.bfloat16),
                  ((0, red_pad - n), (0, f_in_p - f_in)))
    w1p = jnp.pad((w1 * a_scale).astype(jnp.bfloat16),
                  ((0, f_in_p - f_in), (0, f_hid_p - f_hid)))
    w2p = jnp.pad((w2 * a_scale).astype(jnp.bfloat16),
                  ((0, f_hid_p - f_hid), (0, f_out_p - f_out)))
    b1p = jnp.pad(b1.astype(jnp.float32), (0, f_hid_p - f_hid)).reshape(1, f_hid_p)
    b2p = jnp.pad(b2.astype(jnp.float32), (0, f_out_p - f_out)).reshape(1, f_out_p)

    # Layer 1: relu(A_hat @ (X @ W1) + b1), kept padded bf16 for layer 2.
    xw1 = feat_xform(x16, w1p, feat_tm)                      # (red_pad, f_hid_p)
    h = aggregate_relu(a_q, xw1, b1p, jnp.bfloat16, tm, tk)  # (rows_pad, f_hid_p)
    if red_pad > rows_pad:
        # Tiny re-pad of H (not A); padded rows hit all-zero A columns.
        h = jnp.pad(h, ((0, red_pad - rows_pad), (0, 0)))

    # Layer 2: relu(A_hat @ (H @ W2) + b2), final output in f32.
    xw2 = feat_xform(h, w2p, feat_tm)
    out = aggregate_relu(a_q, xw2, b2p, jnp.float32, tm, tk)

    return out[:n, :f_out]


# ---------------------------------------------------------------------------
# Synthetic graph + parameter init
# ---------------------------------------------------------------------------
def build_normalized_adjacency(key, n_nodes, avg_degree=4):
    """Dense synthetic random graph + DGL norm='both' normalization."""
    p_edge = avg_degree / n_nodes
    # A[i, j] = 1 iff edge j -> i (message src j -> dst i), no self loops.
    a = (jax.random.uniform(key, (n_nodes, n_nodes)) < p_edge).astype(jnp.float32)
    out_deg = jnp.clip(a.sum(axis=0), 1.0)  # out-degree of src node j
    in_deg = jnp.clip(a.sum(axis=1), 1.0)   # in-degree of dst node i
    return (in_deg ** -0.5)[:, None] * a * (out_deg ** -0.5)[None, :]


def glorot(key, shape):
    fan_in, fan_out = shape
    limit = (6.0 / (fan_in + fan_out)) ** 0.5
    return jax.random.uniform(key, shape, jnp.float32, -limit, limit)


if __name__ == "__main__":
    # Small, TPU-friendly shapes (Cora itself would be 2708 x 1433; synthetic here).
    N = 128            # number of nodes
    IN_FEATS = 128     # in_features
    HIDDEN = 64        # hidden_features
    OUT = 32           # out_features

    key = jax.random.PRNGKey(0)
    k_graph, k_x, k_w1, k_w2 = jax.random.split(key, 4)

    a_hat = build_normalized_adjacency(k_graph, N)
    x = jax.random.normal(k_x, (N, IN_FEATS), jnp.float32)

    # GraphConv-style init: xavier_uniform weight, zero bias.
    w1 = glorot(k_w1, (IN_FEATS, HIDDEN))
    b1 = jnp.zeros((HIDDEN,), jnp.float32)
    w2 = glorot(k_w2, (HIDDEN, OUT))
    b2 = jnp.zeros((OUT,), jnp.float32)

    # One-time graph prep (hoisted out of the jitted forward).
    tm, tk = _pick_tiles(N)
    a_q, a_scale = prepare_adjacency(a_hat, tm, tk)

    out = two_layer_gcn(a_q, a_scale, x, w1, b1, w2, b2, tm=tm, tk=tk)
    out = jax.block_until_ready(out)

    # Pure-JAX reference mirroring the kernel's int8-A / bf16 / f32-accum path.
    a_q_bf16 = a_q[:N, :N].astype(jnp.float32).astype(jnp.bfloat16)

    def ref_layer(xx, w, b):
        xw = jnp.dot(xx.astype(jnp.bfloat16),
                     (w * a_scale).astype(jnp.bfloat16),
                     preferred_element_type=jnp.float32).astype(jnp.bfloat16)
        agg = jnp.dot(a_q_bf16, xw, preferred_element_type=jnp.float32)
        return jnp.maximum(agg + b[None, :], 0.0)

    h_ref = ref_layer(x, w1, b1).astype(jnp.bfloat16).astype(jnp.float32)
    ref = ref_layer(h_ref, w2, b2)

    assert out.shape == (N, OUT)
    assert jnp.allclose(out, ref, atol=2e-2, rtol=2e-2), \
        float(jnp.max(jnp.abs(out - ref)))

    print("KERNEL_OK")
</pallas_src>

<mosaic_0001>
module attributes {stable_mosaic.version = 11 : i64} {
  func.func @_feat_xform_kernel(%arg0: i32, %arg1: memref<128x128xbf16, #tpu.memory_space<vmem>>, %arg2: memref<128x128xbf16, #tpu.memory_space<vmem>>, %arg3: memref<128x128xbf16, #tpu.memory_space<vmem>>) attributes {dimension_semantics = [#tpu.dimension_semantics<parallel>], iteration_bounds = array<i64: 1>, scalar_prefetch = 0 : i64, scratch_operands = 0 : i64, tpu.core_type = #tpu.core_type<tc>, window_params = [{transform_indices = @transform_0, window_bounds = array<i64: 128, 128>}, {pipeline_mode = #tpu.pipeline_mode<synchronous>, transform_indices = @transform_1, window_bounds = array<i64: 128, 128>}, {transform_indices = @transform_2, window_bounds = array<i64: 128, 128>}]} {
    %c0 = arith.constant 0 : index
    %c0_0 = arith.constant 0 : index
    %0 = vector.load %arg1[%c0, %c0_0] : memref<128x128xbf16, #tpu.memory_space<vmem>>, vector<128x128xbf16>
    %c0_1 = arith.constant 0 : index
    %c0_2 = arith.constant 0 : index
    %1 = vector.load %arg2[%c0_1, %c0_2] : memref<128x128xbf16, #tpu.memory_space<vmem>>, vector<128x128xbf16>
    %cst = arith.constant dense<0.000000e+00> : vector<128x128xf32>
    %2 = tpu.matmul %0, %1, %cst {dimension_numbers = #tpu.dot_dimension_numbers<[1], [0], [0], [1], [0, 0, 1, 1], [], []>} : vector<128x128xbf16>, vector<128x128xbf16>, vector<128x128xf32> -> vector<128x128xf32>
    %3 = arith.truncf %2 : vector<128x128xf32> to vector<128x128xbf16>
    %c0_3 = arith.constant 0 : index
    %c0_4 = arith.constant 0 : index
    %4 = vector.load %arg3[%c0_3, %c0_4] : memref<128x128xbf16, #tpu.memory_space<vmem>>, vector<128x128xbf16>
    tpu.vector_store %arg3[%c0_3, %c0_4], %3 {strides = array<i32>} : memref<128x128xbf16, #tpu.memory_space<vmem>>, vector<128x128xbf16>,
    return
  }
  func.func @transform_0(%arg0: i32) -> (i32, i32) {
    %c0_i32 = arith.constant 0 : i32
    %c0_i32_0 = arith.constant 0 : i32
    return %arg0, %c0_i32 : i32, i32
  }
  func.func @transform_1(%arg0: i32) -> (i32, i32) {
    %c0_i32 = arith.constant 0 : i32
    %c0_i32_0 = arith.constant 0 : i32
    %c0_i32_1 = arith.constant 0 : i32
    return %c0_i32, %c0_i32_0 : i32, i32
  }
  func.func @transform_2(%arg0: i32) -> (i32, i32) {
    %c0_i32 = arith.constant 0 : i32
    %c0_i32_0 = arith.constant 0 : i32
    return %arg0, %c0_i32 : i32, i32
  }
}

module attributes {stable_mosaic.version = 11 : i64} {
  func.func @_aggregate_kernel(%arg0: i32, %arg1: i32, %arg2: memref<128x128xi8, #tpu.memory_space<vmem>>, %arg3: memref<128x128xbf16, #tpu.memory_space<vmem>>, %arg4: memref<1x128xf32, #tpu.memory_space<vmem>>, %arg5: memref<128x128xbf16, #tpu.memory_space<vmem>>, %arg6: memref<128x128xf32, #tpu.memory_space<vmem>>) attributes {dimension_semantics = [#tpu.dimension_semantics<parallel>, #tpu.dimension_semantics<arbitrary>], iteration_bounds = array<i64: 1, 1>, scalar_prefetch = 0 : i64, scratch_operands = 1 : i64, tpu.core_type = #tpu.core_type<tc>, window_params = [{transform_indices = @transform_0, window_bounds = array<i64: 128, 128>}, {transform_indices = @transform_1, window_bounds = array<i64: 128, 128>}, {pipeline_mode = #tpu.pipeline_mode<synchronous>, transform_indices = @transform_2, window_bounds = array<i64: 1, 128>}, {transform_indices = @transform_3, window_bounds = array<i64: 128, 128>}]} {
    %c0_i32 = arith.constant 0 : i32
    %0 = arith.cmpi eq, %arg1, %c0_i32 : i32
    %1 = arith.extui %0 : i1 to i32
    %c0_i32_0 = arith.constant 0 : i32
    %2 = arith.cmpi ne, %1, %c0_i32_0 : i32
    scf.if %2 {
      %cst_10 = arith.constant 0.000000e+00 : f32
      %14 = vector.broadcast %cst_10 : f32 to vector<128x128xf32>
      %c0_11 = arith.constant 0 : index
      %c0_12 = arith.constant 0 : index
      %15 = vector.load %arg6[%c0_11, %c0_12] : memref<128x128xf32, #tpu.memory_space<vmem>>, vector<128x128xf32>
      tpu.vector_store %arg6[%c0_11, %c0_12], %14 {strides = array<i32>} : memref<128x128xf32, #tpu.memory_space<vmem>>, vector<128x128xf32>,
    } else {
    }
    %c0 = arith.constant 0 : index
    %c0_1 = arith.constant 0 : index
    %3 = vector.load %arg2[%c0, %c0_1] : memref<128x128xi8, #tpu.memory_space<vmem>>, vector<128x128xi8>
    %4 = arith.sitofp %3 : vector<128x128xi8> to vector<128x128xf32>
    %5 = arith.truncf %4 : vector<128x128xf32> to vector<128x128xbf16>
    %c0_2 = arith.constant 0 : index
    %c0_3 = arith.constant 0 : index
    %6 = vector.load %arg6[%c0_2, %c0_3] : memref<128x128xf32, #tpu.memory_space<vmem>>, vector<128x128xf32>
    %c0_4 = arith.constant 0 : index
    %c0_5 = arith.constant 0 : index
    %7 = vector.load %arg3[%c0_4, %c0_5] : memref<128x128xbf16, #tpu.memory_space<vmem>>, vector<128x128xbf16>
    %cst = arith.constant dense<0.000000e+00> : vector<128x128xf32>
    %8 = tpu.matmul %5, %7, %cst {dimension_numbers = #tpu.dot_dimension_numbers<[1], [0], [0], [1], [0, 0, 1, 1], [], []>} : vector<128x128xbf16>, vector<128x128xbf16>, vector<128x128xf32> -> vector<128x128xf32>
    %9 = arith.addf %6, %8 : vector<128x128xf32>
    %c0_6 = arith.constant 0 : index
    %c0_7 = arith.constant 0 : index
    %10 = vector.load %arg6[%c0_6, %c0_7] : memref<128x128xf32, #tpu.memory_space<vmem>>, vector<128x128xf32>
    tpu.vector_store %arg6[%c0_6, %c0_7], %9 {strides = array<i32>} : memref<128x128xf32, #tpu.memory_space<vmem>>, vector<128x128xf32>,
    %c0_i32_8 = arith.constant 0 : i32
    %11 = arith.cmpi eq, %arg1, %c0_i32_8 : i32
    %12 = arith.extui %11 : i1 to i32
    %c0_i32_9 = arith.constant 0 : i32
    %13 = arith.cmpi ne, %12, %c0_i32_9 : i32
    scf.if %13 {
      %c0_10 = arith.constant 0 : index
      %c0_11 = arith.constant 0 : index
      %14 = vector.load %arg6[%c0_10, %c0_11] : memref<128x128xf32, #tpu.memory_space<vmem>>, vector<128x128xf32>
      %c0_12 = arith.constant 0 : index
      %c0_13 = arith.constant 0 : index
      %15 = vector.load %arg4[%c0_12, %c0_13] : memref<1x128xf32, #tpu.memory_space<vmem>>, vector<1x128xf32>
      %16 = vector.broadcast %15 : vector<1x128xf32> to vector<128x128xf32>
      %17 = arith.addf %14, %16 : vector<128x128xf32>
      %cst_14 = arith.constant 0.000000e+00 : f32
      %18 = vector.broadcast %cst_14 : f32 to vector<128x128xf32>
      %19 = arith.maximumf %17, %18 : vector<128x128xf32>
      %20 = arith.truncf %19 : vector<128x128xf32> to vector<128x128xbf16>
      %c0_15 = arith.constant 0 : index
      %c0_16 = arith.constant 0 : index
      %21 = vector.load %arg5[%c0_15, %c0_16] : memref<128x128xbf16, #tpu.memory_space<vmem>>, vector<128x128xbf16>
      tpu.vector_store %arg5[%c0_15, %c0_16], %20 {strides = array<i32>} : memref<128x128xbf16, #tpu.memory_space<vmem>>, vector<128x128xbf16>,
    } else {
    }
    return
  }
  func.func @transform_0(%arg0: i32, %arg1: i32) -> (i32, i32) {
    %c0_i32 = arith.constant 0 : i32
    return %arg0, %arg1 : i32, i32
  }
  func.func @transform_1(%arg0: i32, %arg1: i32) -> (i32, i32) {
    %c0_i32 = arith.constant 0 : i32
    %c0_i32_0 = arith.constant 0 : i32
    return %arg1, %c0_i32 : i32, i32
  }
  func.func @transform_2(%arg0: i32, %arg1: i32) -> (i32, i32) {
    %c0_i32 = arith.constant 0 : i32
    %c0_i32_0 = arith.constant 0 : i32
    %c0_i32_1 = arith.constant 0 : i32
    return %c0_i32, %c0_i32_0 : i32, i32
  }
  func.func @transform_3(%arg0: i32, %arg1: i32) -> (i32, i32) {
    %c0_i32 = arith.constant 0 : i32
    %c0_i32_0 = arith.constant 0 : i32
    return %arg0, %c0_i32 : i32, i32
  }
}

module attributes {stable_mosaic.version = 11 : i64} {
  func.func @_aggregate_kernel(%arg0: i32, %arg1: i32, %arg2: memref<128x128xi8, #tpu.memory_space<vmem>>, %arg3: memref<128x128xbf16, #tpu.memory_space<vmem>>, %arg4: memref<1x128xf32, #tpu.memory_space<vmem>>, %arg5: memref<128x128xf32, #tpu.memory_space<vmem>>, %arg6: memref<128x128xf32, #tpu.memory_space<vmem>>) attributes {dimension_semantics = [#tpu.dimension_semantics<parallel>, #tpu.dimension_semantics<arbitrary>], iteration_bounds = array<i64: 1, 1>, scalar_prefetch = 0 : i64, scratch_operands = 1 : i64, tpu.core_type = #tpu.core_type<tc>, window_params = [{transform_indices = @transform_0, window_bounds = array<i64: 128, 128>}, {transform_indices = @transform_1, window_bounds = array<i64: 128, 128>}, {pipeline_mode = #tpu.pipeline_mode<synchronous>, transform_indices = @transform_2, window_bounds = array<i64: 1, 128>}, {transform_indices = @transform_3, window_bounds = array<i64: 128, 128>}]} {
    %c0_i32 = arith.constant 0 : i32
    %0 = arith.cmpi eq, %arg1, %c0_i32 : i32
    %1 = arith.extui %0 : i1 to i32
    %c0_i32_0 = arith.constant 0 : i32
    %2 = arith.cmpi ne, %1, %c0_i32_0 : i32
    scf.if %2 {
      %cst_10 = arith.constant 0.000000e+00 : f32
      %14 = vector.broadcast %cst_10 : f32 to vector<128x128xf32>
      %c0_11 = arith.constant 0 : index
      %c0_12 = arith.constant 0 : index
      %15 = vector.load %arg6[%c0_11, %c0_12] : memref<128x128xf32, #tpu.memory_space<vmem>>, vector<128x128xf32>
      tpu.vector_store %arg6[%c0_11, %c0_12], %14 {strides = array<i32>} : memref<128x128xf32, #tpu.memory_space<vmem>>, vector<128x128xf32>,
    } else {
    }
    %c0 = arith.constant 0 : index
    %c0_1 = arith.constant 0 : index
    %3 = vector.load %arg2[%c0, %c0_1] : memref<128x128xi8, #tpu.memory_space<vmem>>, vector<128x128xi8>
    %4 = arith.sitofp %3 : vector<128x128xi8> to vector<128x128xf32>
    %5 = arith.truncf %4 : vector<128x128xf32> to vector<128x128xbf16>
    %c0_2 = arith.constant 0 : index
    %c0_3 = arith.constant 0 : index
    %6 = vector.load %arg6[%c0_2, %c0_3] : memref<128x128xf32, #tpu.memory_space<vmem>>, vector<128x128xf32>
    %c0_4 = arith.constant 0 : index
    %c0_5 = arith.constant 0 : index
    %7 = vector.load %arg3[%c0_4, %c0_5] : memref<128x128xbf16, #tpu.memory_space<vmem>>, vector<128x128xbf16>
    %cst = arith.constant dense<0.000000e+00> : vector<128x128xf32>
    %8 = tpu.matmul %5, %7, %cst {dimension_numbers = #tpu.dot_dimension_numbers<[1], [0], [0], [1], [0, 0, 1, 1], [], []>} : vector<128x128xbf16>, vector<128x128xbf16>, vector<128x128xf32> -> vector<128x128xf32>
    %9 = arith.addf %6, %8 : vector<128x128xf32>
    %c0_6 = arith.constant 0 : index
    %c0_7 = arith.constant 0 : index
    %10 = vector.load %arg6[%c0_6, %c0_7] : memref<128x128xf32, #tpu.memory_space<vmem>>, vector<128x128xf32>
    tpu.vector_store %arg6[%c0_6, %c0_7], %9 {strides = array<i32>} : memref<128x128xf32, #tpu.memory_space<vmem>>, vector<128x128xf32>,
    %c0_i32_8 = arith.constant 0 : i32
    %11 = arith.cmpi eq, %arg1, %c0_i32_8 : i32
    %12 = arith.extui %11 : i1 to i32
    %c0_i32_9 = arith.constant 0 : i32
    %13 = arith.cmpi ne, %12, %c0_i32_9 : i32
    scf.if %13 {
      %c0_10 = arith.constant 0 : index
      %c0_11 = arith.constant 0 : index
      %14 = vector.load %arg6[%c0_10, %c0_11] : memref<128x128xf32, #tpu.memory_space<vmem>>, vector<128x128xf32>
      %c0_12 = arith.constant 0 : index
      %c0_13 = arith.constant 0 : index
      %15 = vector.load %arg4[%c0_12, %c0_13] : memref<1x128xf32, #tpu.memory_space<vmem>>, vector<1x128xf32>
      %16 = vector.broadcast %15 : vector<1x128xf32> to vector<128x128xf32>
      %17 = arith.addf %14, %16 : vector<128x128xf32>
      %cst_14 = arith.constant 0.000000e+00 : f32
      %18 = vector.broadcast %cst_14 : f32 to vector<128x128xf32>
      %19 = arith.maximumf %17, %18 : vector<128x128xf32>
      %c0_15 = arith.constant 0 : index
      %c0_16 = arith.constant 0 : index
      %20 = vector.load %arg5[%c0_15, %c0_16] : memref<128x128xf32, #tpu.memory_space<vmem>>, vector<128x128xf32>
      tpu.vector_store %arg5[%c0_15, %c0_16], %19 {strides = array<i32>} : memref<128x128xf32, #tpu.memory_space<vmem>>, vector<128x128xf32>,
    } else {
    }
    return
  }
  func.func @transform_0(%arg0: i32, %arg1: i32) -> (i32, i32) {
    %c0_i32 = arith.constant 0 : i32
    return %arg0, %arg1 : i32, i32
  }
  func.func @transform_1(%arg0: i32, %arg1: i32) -> (i32, i32) {
    %c0_i32 = arith.constant 0 : i32
    %c0_i32_0 = arith.constant 0 : i32
    return %arg1, %c0_i32 : i32, i32
  }
  func.func @transform_2(%arg0: i32, %arg1: i32) -> (i32, i32) {
    %c0_i32 = arith.constant 0 : i32
    %c0_i32_0 = arith.constant 0 : i32
    %c0_i32_1 = arith.constant 0 : i32
    return %c0_i32, %c0_i32_0 : i32, i32
  }
  func.func @transform_3(%arg0: i32, %arg1: i32) -> (i32, i32) {
    %c0_i32 = arith.constant 0 : i32
    %c0_i32_0 = arith.constant 0 : i32
    return %arg0, %c0_i32 : i32, i32
  }
}

</mosaic_0001>

<bundles_post_ra>
// kernel: two_layer_gcn.4
= control target key start
LH: loop header
LB: loop body
LE: loop exit
PB: predicated region body
PF: predicated region fallthrough
CT: control target
= control target key end

     0   :  { %s462_s1 = inlined_call_operand.vmem [shape: bf16[128,128], index: 1, kind: input, shape index: {}]   ;;  %s463_s0 = inlined_call_operand.vmem [shape: bf16[128,128], index: 0, kind: input, shape index: {}]   ;;  %s464_s2 = inlined_call_operand.vmem [shape: bf16[128,128], index: 2, kind: output, shape index: {}]  }
   0x1   :  { %v303_v0 = vld [vmem:[%s462_s1 + $0x38] sm:$0xff]  ;;  %v302_v1 = vld [vmem:[%s462_s1 + $0x30] sm:$0xff]  ;;  %v301_v2 = vld [vmem:[%s462_s1 + $0x28] sm:$0xff] }
   0x2   :  { %139 = vmatpush.bf16.msra.mxu0 %v303_v0  ;;  %351 = vmatpush.bf16.msra.mxu1 %v303_v0  ;;  %v300_v3 = vld [vmem:[%s462_s1 + $0x20] sm:$0xff]  ;;  %v299_v4 = vld [vmem:[%s462_s1 + $0x18] sm:$0xff]  ;;  %v298_v5 = vld [vmem:[%s462_s1 + $0x10] sm:$0xff] }
   0x3   :  { %352 = vmatpush.bf16.msra.mxu2 %v303_v0  ;;  %353 = vmatpush.bf16.msra.mxu3 %v303_v0  ;;  %v297_v6 = vld [vmem:[%s462_s1 + $0x8] sm:$0xff]  ;;  %v296_v7 = vld [vmem:[%s462_s1] sm:$0xff]  ;;  %v290_v9 = vld [vmem:[%s463_s0 + $0x10] sm:$0xff] }
   0x4   :  { %v288_v8 = vld [vmem:[%s463_s0] sm:$0xff]  ;;  %v294_v11 = vld [vmem:[%s463_s0 + $0x30] sm:$0xff]  ;;  %v289_v12 = vld [vmem:[%s463_s0 + $0x8] sm:$0xff] }
   0x5   :  { %v292_v10 = vld [vmem:[%s463_s0 + $0x20] sm:$0xff]  ;;  %v291_v13 = vld [vmem:[%s463_s0 + $0x18] sm:$0xff]  ;;  %v293_v14 = vld [vmem:[%s463_s0 + $0x28] sm:$0xff] }
   0x6   :  { %140 = vmatpush.bf16.msra.mxu0 %v302_v1  ;;  %354 = vmatpush.bf16.msra.mxu1 %v302_v1  ;;  %v295_v15 = vld [vmem:[%s463_s0 + $0x38] sm:$0xff] }
   0x7   :  { %355 = vmatpush.bf16.msra.mxu2 %v302_v1  ;;  %356 = vmatpush.bf16.msra.mxu3 %v302_v1 }
   0xa   :  { %141 = vmatpush.bf16.msra.mxu0 %v301_v2  ;;  %357 = vmatpush.bf16.msra.mxu1 %v301_v2 }
   0xb   :  { %358 = vmatpush.bf16.msra.mxu2 %v301_v2  ;;  %359 = vmatpush.bf16.msra.mxu3 %v301_v2 }
   0xe   :  { %142 = vmatpush.bf16.msra.mxu0 %v300_v3  ;;  %360 = vmatpush.bf16.msra.mxu1 %v300_v3 }
   0xf   :  { %361 = vmatpush.bf16.msra.mxu2 %v300_v3  ;;  %362 = vmatpush.bf16.msra.mxu3 %v300_v3 }
  0x12   :  { %143 = vmatpush.bf16.msra.mxu0 %v299_v4  ;;  %363 = vmatpush.bf16.msra.mxu1 %v299_v4 }
  0x13   :  { %364 = vmatpush.bf16.msra.mxu2 %v299_v4  ;;  %365 = vmatpush.bf16.msra.mxu3 %v299_v4 }
  0x16   :  { %144 = vmatpush.bf16.msra.mxu0 %v298_v5  ;;  %366 = vmatpush.bf16.msra.mxu1 %v298_v5 }
  0x17   :  { %367 = vmatpush.bf16.msra.mxu2 %v298_v5  ;;  %368 = vmatpush.bf16.msra.mxu3 %v298_v5 }
  0x1a   :  { %145 = vmatpush.bf16.msra.mxu0 %v297_v6  ;;  %369 = vmatpush.bf16.msra.mxu1 %v297_v6 }
  0x1b   :  { %370 = vmatpush.bf16.msra.mxu2 %v297_v6  ;;  %371 = vmatpush.bf16.msra.mxu3 %v297_v6 }
  0x1e   :  { %146 = vmatpush.bf16.msra.mxu0 %v296_v7  ;;  %372 = vmatpush.bf16.msra.mxu1 %v296_v7 }
  0x1f   :  { %373 = vmatpush.bf16.msra.mxu2 %v296_v7  ;;  %374 = vmatpush.bf16.msra.mxu3 %v296_v7 }
  0x21   :  { %147 = vmatmul.bf16.vlgmr.msra.gmra.mxu0 %v288_v8  ;;  %157 = vmatmul.bf16.vlgmr.msra.gmra.mxu1 %v290_v9 }
  0x22   :  { %167 = vmatmul.bf16.vlgmr.msra.gmra.mxu2 %v292_v10  ;;  %177 = vmatmul.bf16.vlgmr.msra.gmra.mxu3 %v294_v11 }
  0x31   :  { %152 = vmatmul.bf16.gmra.mxu0 %v289_v12  ;;  %162 = vmatmul.bf16.gmra.mxu1 %v291_v13 }
  0x32   :  { %172 = vmatmul.bf16.gmra.mxu2 %v293_v14  ;;  %182 = vmatmul.bf16.gmra.mxu3 %v295_v15 }
  0x9e   :  { %v148_v16 = vpop.f32.mrf.mxu0  ;;  %v158_v17 = vpop.f32.mrf.mxu1 }
  0xa5   :  { %v168_v18 = vpop.f32.mrf.mxu2  ;;  %v178_v19 = vpop.f32.mrf.mxu3 }
  0xa6   :  { %v150_v20 = vpop.f32.mrf.mxu0  ;;  %v160_v21 = vpop.f32.mrf.mxu1 }
  0xa7   :  { %v307_v22 = vpack.c.bf16 %v150_v20, %v148_v16  ;;  %v317_v23 = vpack.c.bf16 %v160_v21, %v158_v17 }
  0xa9   :  { %308 = vst [vmem:[%s464_s2] sm:$0xff] %v307_v22  }
  0xaa   :  { %345 = vst [vmem:[%s464_s2 + $0x10] sm:$0xff] %v317_v23  }
  0xad   :  { %v170_v24 = vpop.f32.mrf.mxu2  ;;  %v180_v25 = vpop.f32.mrf.mxu3 }
  0xae   :  { %v327_v26 = vpack.c.bf16 %v170_v24, %v168_v18  ;;  %v337_v27 = vpack.c.bf16 %v180_v25, %v178_v19  ;;  %v153_v28 = vpop.f32.mrf.mxu0  ;;  %v163_v29 = vpop.f32.mrf.mxu1 }
  0xb0   :  { %347 = vst [vmem:[%s464_s2 + $0x20] sm:$0xff] %v327_v26  }
  0xb1   :  { %349 = vst [vmem:[%s464_s2 + $0x30] sm:$0xff] %v337_v27  }
  0xb5   :  { %v173_v30 = vpop.f32.mrf.mxu2  ;;  %v183_v31 = vpop.f32.mrf.mxu3 }
  0xb6   :  { %v155_v32 = vpop.f32.mrf.mxu0  ;;  %v165_v33 = vpop.f32.mrf.mxu1 }
  0xb7   :  { %v312_v34 = vpack.c.bf16 %v155_v32, %v153_v28  ;;  %v322_v35 = vpack.c.bf16 %v165_v33, %v163_v29 }
  0xb9   :  { %344 = vst [vmem:[%s464_s2 + $0x8] sm:$0xff] %v312_v34  }
  0xba   :  { %346 = vst [vmem:[%s464_s2 + $0x18] sm:$0xff] %v322_v35  }
  0xbd   :  { %v175_v36 = vpop.f32.mrf.mxu2  ;;  %v185_v37 = vpop.f32.mrf.mxu3 }
  0xbe   :  { %v332_v38 = vpack.c.bf16 %v175_v36, %v173_v30  ;;  %v342_v39 = vpack.c.bf16 %v185_v37, %v183_v31 }
  0xc0   :  { %348 = vst [vmem:[%s464_s2 + $0x28] sm:$0xff] %v332_v38  }
  0xc1   :  { %350 = vst [vmem:[%s464_s2 + $0x38] sm:$0xff] %v342_v39  }

// kernel: two_layer_gcn.5
= control target key start
LH: loop header
LB: loop body
LE: loop exit
PB: predicated region body
PF: predicated region fallthrough
CT: control target
= control target key end

     0   :  { %s525_s1 = inlined_call_operand.vmem [shape: bf16[128,128], index: 1, kind: input, shape index: {}]   ;;  %s526_s2 = inlined_call_operand.vmem [shape: f32[1,128], index: 2, kind: input, shape index: {}]   ;;  %s527_s0 = inlined_call_operand.vmem [shape: s8[128,128], index: 0, kind: input, shape index: {}]   ;;  %s528_s3 = inlined_call_operand.vmem [shape: bf16[128,128], index: 3, kind: output, shape index: {}]  }
   0x1   :  { %v369_v0 = vld [vmem:[%s525_s1 + $0x38] sm:$0xff]  ;;  %v368_v1 = vld [vmem:[%s525_s1 + $0x30] sm:$0xff]  ;;  %v367_v2 = vld [vmem:[%s525_s1 + $0x28] sm:$0xff] }
   0x2   :  { %158 = vmatpush.bf16.msra.mxu0 %v369_v0  ;;  %417 = vmatpush.bf16.msra.mxu1 %v369_v0  ;;  %v366_v3 = vld [vmem:[%s525_s1 + $0x20] sm:$0xff]  ;;  %v365_v4 = vld [vmem:[%s525_s1 + $0x18] sm:$0xff]  ;;  %v364_v5 = vld [vmem:[%s525_s1 + $0x10] sm:$0xff] }
   0x3   :  { %418 = vmatpush.bf16.msra.mxu2 %v369_v0  ;;  %419 = vmatpush.bf16.msra.mxu3 %v369_v0  ;;  %v34_v6 = vld [vmem:[%s527_s0] sm:$0xff]  ;;  %v35_v7 = vld [vmem:[%s527_s0 + $0x8] sm:$0xff]  ;;  %v36_v8 = vld [vmem:[%s527_s0 + $0x10] sm:$0xff] }
   0x4   :  { %v37_v9 = vld [vmem:[%s527_s0 + $0x18] sm:$0xff]  ;;  %v38_v10 = vunpack.c.0.s8 %v34_v6  ;;  %v39_v11 = vunpack.c.1.s8 %v34_v6  ;;  %v42_v12 = vunpack.c.0.s8 %v35_v7  ;;  %v43_v13 = vunpack.c.1.s8 %v35_v7  ;;  %v363_v14 = vld [vmem:[%s525_s1 + $0x8] sm:$0xff]  ;;  %v362_v23 = vld [vmem:[%s525_s1] sm:$0xff] }
   0x5   :  { %v46_v15 = vunpack.c.0.s8 %v36_v8  ;;  %v47_v16 = vunpack.c.1.s8 %v36_v8  ;;  %v50_v17 = vunpack.c.0.s8 %v37_v9  ;;  %v51_v18 = vunpack.c.1.s8 %v37_v9  ;;  %v441_v54 = vld [vmem:[%s526_s2] ss:$0 sm:$0xff] }
   0x6   :  { %159 = vmatpush.bf16.msra.mxu0 %v368_v1  ;;  %420 = vmatpush.bf16.msra.mxu1 %v368_v1  ;;  %v54_v19 = vcvt.s32.f32 %v38_v10  ;;  %v55_v20 = vcvt.s32.f32 %v39_v11  ;;  %v58_v21 = vcvt.s32.f32 %v42_v12  ;;  %v59_v22 = vcvt.s32.f32 %v43_v13 }
   0x7   :  { %421 = vmatpush.bf16.msra.mxu2 %v368_v1  ;;  %422 = vmatpush.bf16.msra.mxu3 %v368_v1  ;;  %v62_v24 = vcvt.s32.f32 %v46_v15  ;;  %v63_v25 = vcvt.s32.f32 %v47_v16  ;;  %v66_v26 = vcvt.s32.f32 %v50_v17  ;;  %v67_v27 = vcvt.s32.f32 %v51_v18 }
   0x8   :  { %v70_v28 = vpack.c.bf16 %v55_v20, %v54_v19  ;;  %v72_v29 = vpack.c.bf16 %v59_v22, %v58_v21  ;;  %v40_v32 = vunpack.c.2.s8 %v34_v6  ;;  %v41_v33 = vunpack.c.3.s8 %v34_v6 }
   0x9   :  { %v74_v30 = vpack.c.bf16 %v63_v25, %v62_v24  ;;  %v76_v31 = vpack.c.bf16 %v67_v27, %v66_v26  ;;  %v44_v34 = vunpack.c.2.s8 %v35_v7  ;;  %v45_v35 = vunpack.c.3.s8 %v35_v7 }
   0xa   :  { %160 = vmatpush.bf16.msra.mxu0 %v367_v2  ;;  %423 = vmatpush.bf16.msra.mxu1 %v367_v2  ;;  %v48_v36 = vunpack.c.2.s8 %v36_v8  ;;  %v49_v37 = vunpack.c.3.s8 %v36_v8  ;;  %v52_v38 = vunpack.c.2.s8 %v37_v9  ;;  %v53_v39 = vunpack.c.3.s8 %v37_v9 }
   0xb   :  { %424 = vmatpush.bf16.msra.mxu2 %v367_v2  ;;  %425 = vmatpush.bf16.msra.mxu3 %v367_v2  ;;  %v56_v40 = vcvt.s32.f32 %v40_v32  ;;  %v57_v41 = vcvt.s32.f32 %v41_v33  ;;  %v60_v42 = vcvt.s32.f32 %v44_v34  ;;  %v61_v43 = vcvt.s32.f32 %v45_v35 }
   0xc   :  { %v64_v44 = vcvt.s32.f32 %v48_v36  ;;  %v65_v45 = vcvt.s32.f32 %v49_v37  ;;  %v68_v46 = vcvt.s32.f32 %v52_v38  ;;  %v69_v47 = vcvt.s32.f32 %v53_v39 }
   0xd   :  { %v71_v48 = vpack.c.bf16 %v57_v41, %v56_v40  ;;  %v73_v49 = vpack.c.bf16 %v61_v43, %v60_v42 }
   0xe   :  { %161 = vmatpush.bf16.msra.mxu0 %v366_v3  ;;  %426 = vmatpush.bf16.msra.mxu1 %v366_v3  ;;  %v75_v50 = vpack.c.bf16 %v65_v45, %v64_v44  ;;  %v77_v51 = vpack.c.bf16 %v69_v47, %v68_v46 }
   0xf   :  { %427 = vmatpush.bf16.msra.mxu2 %v366_v3  ;;  %428 = vmatpush.bf16.msra.mxu3 %v366_v3 }
  0x12   :  { %162 = vmatpush.bf16.msra.mxu0 %v365_v4  ;;  %429 = vmatpush.bf16.msra.mxu1 %v365_v4 }
  0x13   :  { %430 = vmatpush.bf16.msra.mxu2 %v365_v4  ;;  %431 = vmatpush.bf16.msra.mxu3 %v365_v4 }
  0x16   :  { %163 = vmatpush.bf16.msra.mxu0 %v364_v5  ;;  %432 = vmatpush.bf16.msra.mxu1 %v364_v5 }
  0x17   :  { %433 = vmatpush.bf16.msra.mxu2 %v364_v5  ;;  %434 = vmatpush.bf16.msra.mxu3 %v364_v5 }
  0x1a   :  { %164 = vmatpush.bf16.msra.mxu0 %v363_v14  ;;  %435 = vmatpush.bf16.msra.mxu1 %v363_v14 }
  0x1b   :  { %436 = vmatpush.bf16.msra.mxu2 %v363_v14  ;;  %437 = vmatpush.bf16.msra.mxu3 %v363_v14 }
  0x1e   :  { %165 = vmatpush.bf16.msra.mxu0 %v362_v23  ;;  %438 = vmatpush.bf16.msra.mxu1 %v362_v23 }
  0x1f   :  { %439 = vmatpush.bf16.msra.mxu2 %v362_v23  ;;  %440 = vmatpush.bf16.msra.mxu3 %v362_v23 }
  0x21   :  { %166 = vmatmul.bf16.vlgmr.msra.gmra.mxu0 %v70_v28  ;;  %176 = vmatmul.bf16.vlgmr.msra.gmra.mxu1 %v72_v29 }
  0x22   :  { %186 = vmatmul.bf16.vlgmr.msra.gmra.mxu2 %v74_v30  ;;  %196 = vmatmul.bf16.vlgmr.msra.gmra.mxu3 %v76_v31 }
  0x31   :  { %171 = vmatmul.bf16.gmra.mxu0 %v71_v48  ;;  %181 = vmatmul.bf16.gmra.mxu1 %v73_v49 }
  0x32   :  { %191 = vmatmul.bf16.gmra.mxu2 %v75_v50  ;;  %201 = vmatmul.bf16.gmra.mxu3 %v77_v51 }
  0x9e   :  { %v167_v52 = vpop.f32.mrf.mxu0  ;;  %v177_v53 = vpop.f32.mrf.mxu1 }
  0x9f   :  { %v262_v55 = vadd.f32 %v441_v54, %v167_v52  ;;  %v266_v56 = vadd.f32 %v441_v54, %v177_v53 }
  0xa1   :  { %v278_v63 = vmax.f32 %v262_v55, 0.0  ;;  %v282_v0 = vmax.f32 %v266_v56, 0.0 }
  0xa5   :  { %v187_v57 = vpop.f32.mrf.mxu2  ;;  %v197_v58 = vpop.f32.mrf.mxu3 }
  0xa6   :  { %v169_v59 = vpop.f32.mrf.mxu0  ;;  %v179_v60 = vpop.f32.mrf.mxu1  ;;  %v270_v5 = vadd.f32 %v441_v54, %v187_v57  ;;  %v274_v6 = vadd.f32 %v441_v54, %v197_v58 }
  0xa7   :  { %v263_v61 = vadd.f32 %v441_v54, %v169_v59  ;;  %v267_v62 = vadd.f32 %v441_v54, %v179_v60 }
  0xa8   :  { %v286_v13 = vmax.f32 %v270_v5, 0.0  ;;  %v290_v14 = vmax.f32 %v274_v6, 0.0 }
  0xa9   :  { %v279_v1 = vmax.f32 %v263_v61, 0.0  ;;  %v283_v2 = vmax.f32 %v267_v62, 0.0 }
  0xab   :  { %v373_v3 = vpack.c.bf16 %v279_v1, %v278_v63  ;;  %v383_v4 = vpack.c.bf16 %v283_v2, %v282_v0 }
  0xad   :  { %374 = vst [vmem:[%s528_s3] sm:$0xff] %v373_v3   ;;  %v189_v7 = vpop.f32.mrf.mxu2  ;;  %v199_v8 = vpop.f32.mrf.mxu3 }
  0xae   :  { %411 = vst [vmem:[%s528_s3 + $0x10] sm:$0xff] %v383_v4   ;;  %v271_v9 = vadd.f32 %v441_v54, %v189_v7  ;;  %v275_v10 = vadd.f32 %v441_v54, %v199_v8  ;;  %v172_v11 = vpop.f32.mrf.mxu0  ;;  %v182_v12 = vpop.f32.mrf.mxu1 }
  0xaf   :  { %v264_v19 = vadd.f32 %v441_v54, %v172_v11  ;;  %v268_v20 = vadd.f32 %v441_v54, %v182_v12 }
  0xb0   :  { %v287_v15 = vmax.f32 %v271_v9, 0.0  ;;  %v291_v16 = vmax.f32 %v275_v10, 0.0 }
  0xb1   :  { %v280_v27 = vmax.f32 %v264_v19, 0.0  ;;  %v284_v28 = vmax.f32 %v268_v20, 0.0 }
  0xb2   :  { %v393_v17 = vpack.c.bf16 %v287_v15, %v286_v13  ;;  %v403_v18 = vpack.c.bf16 %v291_v16, %v290_v14 }
  0xb4   :  { %413 = vst [vmem:[%s528_s3 + $0x20] sm:$0xff] %v393_v17  }
  0xb5   :  { %415 = vst [vmem:[%s528_s3 + $0x30] sm:$0xff] %v403_v18   ;;  %v192_v21 = vpop.f32.mrf.mxu2  ;;  %v202_v22 = vpop.f32.mrf.mxu3 }
  0xb6   :  { %v174_v23 = vpop.f32.mrf.mxu0  ;;  %v184_v24 = vpop.f32.mrf.mxu1  ;;  %v272_v33 = vadd.f32 %v441_v54, %v192_v21  ;;  %v276_v34 = vadd.f32 %v441_v54, %v202_v22 }
  0xb7   :  { %v265_v25 = vadd.f32 %v441_v54, %v174_v23  ;;  %v269_v26 = vadd.f32 %v441_v54, %v184_v24 }
  0xb8   :  { %v288_v39 = vmax.f32 %v272_v33, 0.0  ;;  %v292_v40 = vmax.f32 %v276_v34, 0.0 }
  0xb9   :  { %v281_v29 = vmax.f32 %v265_v25, 0.0  ;;  %v285_v30 = vmax.f32 %v269_v26, 0.0 }
  0xbb   :  { %v378_v31 = vpack.c.bf16 %v281_v29, %v280_v27  ;;  %v388_v32 = vpack.c.bf16 %v285_v30, %v284_v28 }
  0xbd   :  { %410 = vst [vmem:[%s528_s3 + $0x8] sm:$0xff] %v378_v31   ;;  %v194_v35 = vpop.f32.mrf.mxu2  ;;  %v204_v36 = vpop.f32.mrf.mxu3 }
  0xbe   :  { %412 = vst [vmem:[%s528_s3 + $0x18] sm:$0xff] %v388_v32   ;;  %v273_v37 = vadd.f32 %v441_v54, %v194_v35  ;;  %v277_v38 = vadd.f32 %v441_v54, %v204_v36 }
  0xc0   :  { %v289_v41 = vmax.f32 %v273_v37, 0.0  ;;  %v293_v42 = vmax.f32 %v277_v38, 0.0 }
  0xc2   :  { %v398_v43 = vpack.c.bf16 %v289_v41, %v288_v39  ;;  %v408_v44 = vpack.c.bf16 %v293_v42, %v292_v40 }
  0xc4   :  { %414 = vst [vmem:[%s528_s3 + $0x28] sm:$0xff] %v398_v43  }
  0xc5   :  { %416 = vst [vmem:[%s528_s3 + $0x38] sm:$0xff] %v408_v44  }

// kernel: two_layer_gcn.7
= control target key start
LH: loop header
LB: loop body
LE: loop exit
PB: predicated region body
PF: predicated region fallthrough
CT: control target
= control target key end

     0   :  { %s486_s1 = inlined_call_operand.vmem [shape: bf16[128,128], index: 1, kind: input, shape index: {}]   ;;  %s487_s2 = inlined_call_operand.vmem [shape: f32[1,128], index: 2, kind: input, shape index: {}]   ;;  %s488_s0 = inlined_call_operand.vmem [shape: s8[128,128], index: 0, kind: input, shape index: {}]   ;;  %s489_s3 = inlined_call_operand.vmem [shape: f32[128,128], index: 3, kind: output, shape index: {}]  }
   0x1   :  { %v353_v0 = vld [vmem:[%s486_s1 + $0x38] sm:$0xff]  ;;  %v352_v1 = vld [vmem:[%s486_s1 + $0x30] sm:$0xff]  ;;  %v351_v2 = vld [vmem:[%s486_s1 + $0x28] sm:$0xff] }
   0x2   :  { %158 = vmatpush.bf16.msra.mxu0 %v353_v0  ;;  %354 = vmatpush.bf16.msra.mxu1 %v353_v0  ;;  %v350_v3 = vld [vmem:[%s486_s1 + $0x20] sm:$0xff]  ;;  %v349_v4 = vld [vmem:[%s486_s1 + $0x18] sm:$0xff]  ;;  %v348_v5 = vld [vmem:[%s486_s1 + $0x10] sm:$0xff] }
   0x3   :  { %355 = vmatpush.bf16.msra.mxu2 %v353_v0  ;;  %356 = vmatpush.bf16.msra.mxu3 %v353_v0  ;;  %v34_v6 = vld [vmem:[%s488_s0] sm:$0xff]  ;;  %v35_v7 = vld [vmem:[%s488_s0 + $0x8] sm:$0xff]  ;;  %v36_v8 = vld [vmem:[%s488_s0 + $0x10] sm:$0xff] }
   0x4   :  { %v37_v9 = vld [vmem:[%s488_s0 + $0x18] sm:$0xff]  ;;  %v38_v10 = vunpack.c.0.s8 %v34_v6  ;;  %v39_v11 = vunpack.c.1.s8 %v34_v6  ;;  %v42_v12 = vunpack.c.0.s8 %v35_v7  ;;  %v43_v13 = vunpack.c.1.s8 %v35_v7  ;;  %v347_v14 = vld [vmem:[%s486_s1 + $0x8] sm:$0xff]  ;;  %v346_v23 = vld [vmem:[%s486_s1] sm:$0xff] }
   0x5   :  { %v46_v15 = vunpack.c.0.s8 %v36_v8  ;;  %v47_v16 = vunpack.c.1.s8 %v36_v8  ;;  %v50_v17 = vunpack.c.0.s8 %v37_v9  ;;  %v51_v18 = vunpack.c.1.s8 %v37_v9  ;;  %v378_v52 = vld [vmem:[%s487_s2] ss:$0 sm:$0xff] }
   0x6   :  { %159 = vmatpush.bf16.msra.mxu0 %v352_v1  ;;  %357 = vmatpush.bf16.msra.mxu1 %v352_v1  ;;  %v54_v19 = vcvt.s32.f32 %v38_v10  ;;  %v55_v20 = vcvt.s32.f32 %v39_v11  ;;  %v58_v21 = vcvt.s32.f32 %v42_v12  ;;  %v59_v22 = vcvt.s32.f32 %v43_v13 }
   0x7   :  { %358 = vmatpush.bf16.msra.mxu2 %v352_v1  ;;  %359 = vmatpush.bf16.msra.mxu3 %v352_v1  ;;  %v62_v24 = vcvt.s32.f32 %v46_v15  ;;  %v63_v25 = vcvt.s32.f32 %v47_v16  ;;  %v66_v26 = vcvt.s32.f32 %v50_v17  ;;  %v67_v27 = vcvt.s32.f32 %v51_v18 }
   0x8   :  { %v70_v28 = vpack.c.bf16 %v55_v20, %v54_v19  ;;  %v72_v29 = vpack.c.bf16 %v59_v22, %v58_v21  ;;  %v40_v32 = vunpack.c.2.s8 %v34_v6  ;;  %v41_v33 = vunpack.c.3.s8 %v34_v6 }
   0x9   :  { %v74_v30 = vpack.c.bf16 %v63_v25, %v62_v24  ;;  %v76_v31 = vpack.c.bf16 %v67_v27, %v66_v26  ;;  %v44_v34 = vunpack.c.2.s8 %v35_v7  ;;  %v45_v35 = vunpack.c.3.s8 %v35_v7 }
   0xa   :  { %160 = vmatpush.bf16.msra.mxu0 %v351_v2  ;;  %360 = vmatpush.bf16.msra.mxu1 %v351_v2  ;;  %v48_v36 = vunpack.c.2.s8 %v36_v8  ;;  %v49_v37 = vunpack.c.3.s8 %v36_v8  ;;  %v52_v38 = vunpack.c.2.s8 %v37_v9  ;;  %v53_v39 = vunpack.c.3.s8 %v37_v9 }
   0xb   :  { %361 = vmatpush.bf16.msra.mxu2 %v351_v2  ;;  %362 = vmatpush.bf16.msra.mxu3 %v351_v2  ;;  %v56_v40 = vcvt.s32.f32 %v40_v32  ;;  %v57_v41 = vcvt.s32.f32 %v41_v33  ;;  %v60_v42 = vcvt.s32.f32 %v44_v34  ;;  %v61_v43 = vcvt.s32.f32 %v45_v35 }
   0xc   :  { %v64_v44 = vcvt.s32.f32 %v48_v36  ;;  %v65_v45 = vcvt.s32.f32 %v49_v37  ;;  %v68_v46 = vcvt.s32.f32 %v52_v38  ;;  %v69_v47 = vcvt.s32.f32 %v53_v39 }
   0xd   :  { %v71_v48 = vpack.c.bf16 %v57_v41, %v56_v40  ;;  %v73_v49 = vpack.c.bf16 %v61_v43, %v60_v42 }
   0xe   :  { %161 = vmatpush.bf16.msra.mxu0 %v350_v3  ;;  %363 = vmatpush.bf16.msra.mxu1 %v350_v3  ;;  %v75_v50 = vpack.c.bf16 %v65_v45, %v64_v44  ;;  %v77_v51 = vpack.c.bf16 %v69_v47, %v68_v46 }
   0xf   :  { %364 = vmatpush.bf16.msra.mxu2 %v350_v3  ;;  %365 = vmatpush.bf16.msra.mxu3 %v350_v3 }
  0x12   :  { %162 = vmatpush.bf16.msra.mxu0 %v349_v4  ;;  %366 = vmatpush.bf16.msra.mxu1 %v349_v4 }
  0x13   :  { %367 = vmatpush.bf16.msra.mxu2 %v349_v4  ;;  %368 = vmatpush.bf16.msra.mxu3 %v349_v4 }
  0x16   :  { %163 = vmatpush.bf16.msra.mxu0 %v348_v5  ;;  %369 = vmatpush.bf16.msra.mxu1 %v348_v5 }
  0x17   :  { %370 = vmatpush.bf16.msra.mxu2 %v348_v5  ;;  %371 = vmatpush.bf16.msra.mxu3 %v348_v5 }
  0x1a   :  { %164 = vmatpush.bf16.msra.mxu0 %v347_v14  ;;  %372 = vmatpush.bf16.msra.mxu1 %v347_v14 }
  0x1b   :  { %373 = vmatpush.bf16.msra.mxu2 %v347_v14  ;;  %374 = vmatpush.bf16.msra.mxu3 %v347_v14 }
  0x1e   :  { %165 = vmatpush.bf16.msra.mxu0 %v346_v23  ;;  %375 = vmatpush.bf16.msra.mxu1 %v346_v23 }
  0x1f   :  { %376 = vmatpush.bf16.msra.mxu2 %v346_v23  ;;  %377 = vmatpush.bf16.msra.mxu3 %v346_v23 }
  0x21   :  { %166 = vmatmul.bf16.vlgmr.msra.gmra.mxu0 %v70_v28  ;;  %176 = vmatmul.bf16.vlgmr.msra.gmra.mxu1 %v72_v29 }
  0x22   :  { %186 = vmatmul.bf16.vlgmr.msra.gmra.mxu2 %v74_v30  ;;  %196 = vmatmul.bf16.vlgmr.msra.gmra.mxu3 %v76_v31 }
  0x31   :  { %171 = vmatmul.bf16.gmra.mxu0 %v71_v48  ;;  %181 = vmatmul.bf16.gmra.mxu1 %v73_v49 }
  0x32   :  { %191 = vmatmul.bf16.gmra.mxu2 %v75_v50  ;;  %201 = vmatmul.bf16.gmra.mxu3 %v77_v51 }
  0x9e   :  { %v167_v53 = vpop.f32.mrf.mxu0  ;;  %v177_v54 = vpop.f32.mrf.mxu1 }
  0x9f   :  { %v262_v55 = vadd.f32 %v378_v52, %v167_v53  ;;  %v266_v56 = vadd.f32 %v378_v52, %v177_v54 }
  0xa1   :  { %v278_v57 = vmax.f32 %v262_v55, 0.0  ;;  %v282_v58 = vmax.f32 %v266_v56, 0.0 }
  0xa3   :  { %294 = vst [vmem:[%s489_s3] sm:$0xff] %v278_v57 }
  0xa4   :  { %298 = vst [vmem:[%s489_s3 + $0x20] sm:$0xff] %v282_v58 }
  0xa5   :  { %v187_v59 = vpop.f32.mrf.mxu2  ;;  %v197_v60 = vpop.f32.mrf.mxu3 }
  0xa6   :  { %v270_v61 = vadd.f32 %v378_v52, %v187_v59  ;;  %v274_v62 = vadd.f32 %v378_v52, %v197_v60  ;;  %v169_v63 = vpop.f32.mrf.mxu0  ;;  %v179_v0 = vpop.f32.mrf.mxu1 }
  0xa7   :  { %v263_v1 = vadd.f32 %v378_v52, %v169_v63  ;;  %v267_v2 = vadd.f32 %v378_v52, %v179_v0 }
  0xa8   :  { %v286_v3 = vmax.f32 %v270_v61, 0.0  ;;  %v290_v4 = vmax.f32 %v274_v62, 0.0 }
  0xa9   :  { %v279_v5 = vmax.f32 %v263_v1, 0.0  ;;  %v283_v6 = vmax.f32 %v267_v2, 0.0 }
  0xaa   :  { %302 = vst [vmem:[%s489_s3 + $0x40] sm:$0xff] %v286_v3 }
  0xab   :  { %306 = vst [vmem:[%s489_s3 + $0x60] sm:$0xff] %v290_v4 }
  0xac   :  { %295 = vst [vmem:[%s489_s3 + $0x8] sm:$0xff] %v279_v5 }
  0xad   :  { %299 = vst [vmem:[%s489_s3 + $0x28] sm:$0xff] %v283_v6  ;;  %v189_v7 = vpop.f32.mrf.mxu2  ;;  %v199_v8 = vpop.f32.mrf.mxu3 }
  0xae   :  { %v271_v9 = vadd.f32 %v378_v52, %v189_v7  ;;  %v275_v10 = vadd.f32 %v378_v52, %v199_v8  ;;  %v172_v11 = vpop.f32.mrf.mxu0  ;;  %v182_v12 = vpop.f32.mrf.mxu1 }
  0xaf   :  { %v264_v13 = vadd.f32 %v378_v52, %v172_v11  ;;  %v268_v14 = vadd.f32 %v378_v52, %v182_v12 }
  0xb0   :  { %v287_v15 = vmax.f32 %v271_v9, 0.0  ;;  %v291_v16 = vmax.f32 %v275_v10, 0.0 }
  0xb1   :  { %v280_v17 = vmax.f32 %v264_v13, 0.0  ;;  %v284_v18 = vmax.f32 %v268_v14, 0.0 }
  0xb2   :  { %303 = vst [vmem:[%s489_s3 + $0x48] sm:$0xff] %v287_v15 }
  0xb3   :  { %307 = vst [vmem:[%s489_s3 + $0x68] sm:$0xff] %v291_v16 }
  0xb4   :  { %296 = vst [vmem:[%s489_s3 + $0x10] sm:$0xff] %v280_v17 }
  0xb5   :  { %300 = vst [vmem:[%s489_s3 + $0x30] sm:$0xff] %v284_v18  ;;  %v192_v19 = vpop.f32.mrf.mxu2  ;;  %v202_v20 = vpop.f32.mrf.mxu3 }
  0xb6   :  { %v272_v21 = vadd.f32 %v378_v52, %v192_v19  ;;  %v276_v22 = vadd.f32 %v378_v52, %v202_v20  ;;  %v174_v23 = vpop.f32.mrf.mxu0  ;;  %v184_v24 = vpop.f32.mrf.mxu1 }
  0xb7   :  { %v265_v25 = vadd.f32 %v378_v52, %v174_v23  ;;  %v269_v26 = vadd.f32 %v378_v52, %v184_v24 }
  0xb8   :  { %v288_v27 = vmax.f32 %v272_v21, 0.0  ;;  %v292_v28 = vmax.f32 %v276_v22, 0.0 }
  0xb9   :  { %v281_v29 = vmax.f32 %v265_v25, 0.0  ;;  %v285_v30 = vmax.f32 %v269_v26, 0.0 }
  0xba   :  { %304 = vst [vmem:[%s489_s3 + $0x50] sm:$0xff] %v288_v27 }
  0xbb   :  { %308 = vst [vmem:[%s489_s3 + $0x70] sm:$0xff] %v292_v28 }
  0xbc   :  { %297 = vst [vmem:[%s489_s3 + $0x18] sm:$0xff] %v281_v29 }
  0xbd   :  { %301 = vst [vmem:[%s489_s3 + $0x38] sm:$0xff] %v285_v30  ;;  %v194_v31 = vpop.f32.mrf.mxu2  ;;  %v204_v32 = vpop.f32.mrf.mxu3 }
  0xbe   :  { %v273_v33 = vadd.f32 %v378_v52, %v194_v31  ;;  %v277_v34 = vadd.f32 %v378_v52, %v204_v32 }
  0xc0   :  { %v289_v35 = vmax.f32 %v273_v33, 0.0  ;;  %v293_v36 = vmax.f32 %v277_v34, 0.0 }
  0xc2   :  { %305 = vst [vmem:[%s489_s3 + $0x58] sm:$0xff] %v289_v35 }
  0xc3   :  { %309 = vst [vmem:[%s489_s3 + $0x78] sm:$0xff] %v293_v36 }

</bundles_post_ra>
